<compile_context>
chip_gen: v7x
topology: tpu7x:2x2x1
jax: 0.10.0
libtpu: 0.0.40
codegen_flags: <defaults>
</compile_context>

<pallas_src>
import functools

import jax
import jax.numpy as jnp
from jax.experimental import pallas as pl
from jax.experimental.pallas import tpu as pltpu


def _round_up(x, m):
    return ((x + m - 1) // m) * m


def _actor_kernel(max_action,
                  s_ref, w1_ref, b1_ref, w2_ref, b2_ref, w3_ref, b3_ref,
                  o_ref):
    # Layer 1: (TB, S) @ (S, H) + (1, H) -> relu     (bf16 matmul, f32 accumulate)
    a = jnp.dot(s_ref[...].astype(jnp.bfloat16), w1_ref[...],
                preferred_element_type=jnp.float32)
    a = jnp.maximum(a + b1_ref[...], 0.0)
    # Layer 2: (TB, H) @ (H, H) + (1, H) -> relu
    a = jnp.dot(a.astype(jnp.bfloat16), w2_ref[...],
                preferred_element_type=jnp.float32)
    a = jnp.maximum(a + b2_ref[...], 0.0)
    # Layer 3: (TB, H) @ (H, A_pad) + (1, A_pad) -> max_action * tanh
    a = jnp.dot(a.astype(jnp.bfloat16), w3_ref[...],
                preferred_element_type=jnp.float32)
    o_ref[...] = (max_action * jnp.tanh(a + b3_ref[...])).astype(o_ref.dtype)


def actor_forward(state, params, max_action, *, block_b=512):
    """state: (B, state_dim) f32.

    params: dict with
      w1 (S, H) bf16, b1 (1, H) f32, w2 (H, H) bf16, b2 (1, H) f32,
      w3 (H, A) bf16, b3 (1, A) f32.
    Returns (B, A) f32 actions in [-max_action, max_action].
    """
    w1 = params["w1"].astype(jnp.bfloat16)
    w2 = params["w2"].astype(jnp.bfloat16)
    w3 = params["w3"].astype(jnp.bfloat16)
    b1 = params["b1"].astype(jnp.float32)
    b2 = params["b2"].astype(jnp.float32)
    b3 = params["b3"].astype(jnp.float32)

    B, S = state.shape
    H = w1.shape[1]
    A = w3.shape[1]

    # Lane-dense output: pad action dim up to a multiple of 128.
    A_pad = max(128, _round_up(A, 128))
    if A_pad != A:
        w3 = jnp.pad(w3, ((0, 0), (0, A_pad - A)))
        b3 = jnp.pad(b3, ((0, 0), (0, A_pad - A)))

    # Batch tile: multiple of 8 sublanes, capped by block_b (itself tuned to be a
    # multiple of 256 so large batches fill the v6e/v7x MXU; 128-aligned for v5e).
    TB = min(block_b, _round_up(B, 8))
    B_pad = _round_up(B, TB)
    if B_pad != B:
        state = jnp.pad(state, ((0, B_pad - B), (0, 0)))
    n_blocks = B_pad // TB

    kernel = functools.partial(_actor_kernel, float(max_action))

    out = pl.pallas_call(
        kernel,
        out_shape=jax.ShapeDtypeStruct((B_pad, A_pad), jnp.float32),
        grid=(n_blocks,),
        in_specs=[
            pl.BlockSpec((TB, S), lambda i: (i, 0)),   # state: streamed per step
            pl.BlockSpec((S, H), lambda i: (0, 0)),    # w1: resident
            pl.BlockSpec((1, H), lambda i: (0, 0)),    # b1: resident
            pl.BlockSpec((H, H), lambda i: (0, 0)),    # w2: resident
            pl.BlockSpec((1, H), lambda i: (0, 0)),    # b2: resident
            pl.BlockSpec((H, A_pad), lambda i: (0, 0)),  # w3: resident
            pl.BlockSpec((1, A_pad), lambda i: (0, 0)),  # b3: resident
        ],
        out_specs=pl.BlockSpec((TB, A_pad), lambda i: (i, 0)),
        compiler_params=pltpu.CompilerParams(
            dimension_semantics=("parallel",)),
    )(state, w1, b1, w2, b2, w3, b3)

    return out[:B, :A]


def init_actor_params(key, state_dim, action_dim, hidden=256):
    """Init matching nn.Linear default (uniform +/- 1/sqrt(fan_in)).

    Weights are stored bf16 (halves HBM traffic, native MXU dtype); biases f32.
    """
    keys = jax.random.split(key, 6)

    def linear(kw, kb, fan_in, fan_out):
        bound = 1.0 / jnp.sqrt(fan_in)
        w = jax.random.uniform(kw, (fan_in, fan_out), jnp.float32, -bound, bound)
        b = jax.random.uniform(kb, (1, fan_out), jnp.float32, -bound, bound)
        return w.astype(jnp.bfloat16), b

    w1, b1 = linear(keys[0], keys[1], state_dim, hidden)
    w2, b2 = linear(keys[2], keys[3], hidden, hidden)
    w3, b3 = linear(keys[4], keys[5], hidden, action_dim)
    return {"w1": w1, "b1": b1, "w2": w2, "b2": b2, "w3": w3, "b3": b3}


def _ref_forward_mirror(state, params, max_action):
    """Pure-JAX reference mirroring the kernel's dtypes (bf16 dots, f32 acc)."""
    a = jnp.dot(state.astype(jnp.bfloat16), params["w1"].astype(jnp.bfloat16),
                preferred_element_type=jnp.float32)
    a = jnp.maximum(a + params["b1"].astype(jnp.float32), 0.0)
    a = jnp.dot(a.astype(jnp.bfloat16), params["w2"].astype(jnp.bfloat16),
                preferred_element_type=jnp.float32)
    a = jnp.maximum(a + params["b2"].astype(jnp.float32), 0.0)
    a = jnp.dot(a.astype(jnp.bfloat16), params["w3"].astype(jnp.bfloat16),
                preferred_element_type=jnp.float32)
    return max_action * jnp.tanh(a + params["b3"].astype(jnp.float32))


def _ref_forward_f32(state, params, max_action):
    """Full-f32 reference (weights upcast from bf16)."""
    a = jnp.maximum(state @ params["w1"].astype(jnp.float32) + params["b1"], 0.0)
    a = jnp.maximum(a @ params["w2"].astype(jnp.float32) + params["b2"], 0.0)
    return max_action * jnp.tanh(a @ params["w3"].astype(jnp.float32) + params["b3"])


if __name__ == "__main__":
    key = jax.random.PRNGKey(0)
    k_state, k_state2, k_params = jax.random.split(key, 3)

    state_dim = 8
    action_dim = 4
    max_action = 1.0
    params = init_actor_params(k_params, state_dim, action_dim)

    # Case 1: tiny batch (matches typical TD3 single-step inference).
    batch = 2
    state = jax.random.normal(k_state, (batch, state_dim), jnp.float32)
    out = jax.block_until_ready(actor_forward(state, params, max_action))
    assert out.shape == (batch, action_dim)
    ref_m = _ref_forward_mirror(state, params, max_action)
    ref_f = _ref_forward_f32(state, params, max_action)
    assert jnp.allclose(out, ref_m, atol=1e-3, rtol=1e-3)
    assert jnp.allclose(out, ref_f, atol=3e-2, rtol=3e-2)

    # Case 2: larger (still small) batch with a small batch tile to exercise the
    # multi-step grid, resident weights, and batch padding paths.
    batch2 = 42
    state2 = jax.random.normal(k_state2, (batch2, state_dim), jnp.float32)
    out2 = jax.block_until_ready(actor_forward(state2, params, max_action, block_b=16))
    assert out2.shape == (batch2, action_dim)
    ref2_m = _ref_forward_mirror(state2, params, max_action)
    ref2_f = _ref_forward_f32(state2, params, max_action)
    assert jnp.allclose(out2, ref2_m, atol=1e-3, rtol=1e-3)
    assert jnp.allclose(out2, ref2_f, atol=3e-2, rtol=3e-2)

    print("KERNEL_OK")
</pallas_src>

<mosaic_0001>
module attributes {stable_mosaic.version = 11 : i64} {
  func.func @_actor_kernel(%arg0: i32, %arg1: memref<8x8xf32, #tpu.memory_space<vmem>>, %arg2: memref<8x256xbf16, #tpu.memory_space<vmem>>, %arg3: memref<1x256xf32, #tpu.memory_space<vmem>>, %arg4: memref<256x256xbf16, #tpu.memory_space<vmem>>, %arg5: memref<1x256xf32, #tpu.memory_space<vmem>>, %arg6: memref<256x128xbf16, #tpu.memory_space<vmem>>, %arg7: memref<1x128xf32, #tpu.memory_space<vmem>>, %arg8: memref<8x128xf32, #tpu.memory_space<vmem>>) attributes {dimension_semantics = [#tpu.dimension_semantics<parallel>], iteration_bounds = array<i64: 1>, scalar_prefetch = 0 : i64, scratch_operands = 0 : i64, tpu.core_type = #tpu.core_type<tc>, window_params = [{transform_indices = @transform_0, window_bounds = array<i64: 8, 8>}, {pipeline_mode = #tpu.pipeline_mode<synchronous>, transform_indices = @transform_1, window_bounds = array<i64: 8, 256>}, {pipeline_mode = #tpu.pipeline_mode<synchronous>, transform_indices = @transform_2, window_bounds = array<i64: 1, 256>}, {pipeline_mode = #tpu.pipeline_mode<synchronous>, transform_indices = @transform_3, window_bounds = array<i64: 256, 256>}, {pipeline_mode = #tpu.pipeline_mode<synchronous>, transform_indices = @transform_4, window_bounds = array<i64: 1, 256>}, {pipeline_mode = #tpu.pipeline_mode<synchronous>, transform_indices = @transform_5, window_bounds = array<i64: 256, 128>}, {pipeline_mode = #tpu.pipeline_mode<synchronous>, transform_indices = @transform_6, window_bounds = array<i64: 1, 128>}, {transform_indices = @transform_7, window_bounds = array<i64: 8, 128>}]} {
    %c0 = arith.constant 0 : index
    %c0_0 = arith.constant 0 : index
    %0 = vector.load %arg1[%c0, %c0_0] : memref<8x8xf32, #tpu.memory_space<vmem>>, vector<8x8xf32>
    %1 = arith.truncf %0 : vector<8x8xf32> to vector<8x8xbf16>
    %c0_1 = arith.constant 0 : index
    %c0_2 = arith.constant 0 : index
    %2 = vector.load %arg2[%c0_1, %c0_2] : memref<8x256xbf16, #tpu.memory_space<vmem>>, vector<8x256xbf16>
    %cst = arith.constant dense<0.000000e+00> : vector<8x256xf32>
    %3 = tpu.matmul %1, %2, %cst {dimension_numbers = #tpu.dot_dimension_numbers<[1], [0], [0], [1], [0, 0, 1, 1], [], []>} : vector<8x8xbf16>, vector<8x256xbf16>, vector<8x256xf32> -> vector<8x256xf32>
    %c0_3 = arith.constant 0 : index
    %c0_4 = arith.constant 0 : index
    %4 = vector.load %arg3[%c0_3, %c0_4] : memref<1x256xf32, #tpu.memory_space<vmem>>, vector<1x256xf32>
    %5 = vector.broadcast %4 : vector<1x256xf32> to vector<8x256xf32>
    %6 = arith.addf %3, %5 : vector<8x256xf32>
    %cst_5 = arith.constant 0.000000e+00 : f32
    %7 = vector.broadcast %cst_5 : f32 to vector<8x256xf32>
    %8 = arith.maximumf %6, %7 : vector<8x256xf32>
    %9 = arith.truncf %8 : vector<8x256xf32> to vector<8x256xbf16>
    %c0_6 = arith.constant 0 : index
    %c0_7 = arith.constant 0 : index
    %10 = vector.load %arg4[%c0_6, %c0_7] : memref<256x256xbf16, #tpu.memory_space<vmem>>, vector<256x256xbf16>
    %cst_8 = arith.constant dense<0.000000e+00> : vector<8x256xf32>
    %11 = tpu.matmul %9, %10, %cst_8 {dimension_numbers = #tpu.dot_dimension_numbers<[1], [0], [0], [1], [0, 0, 1, 1], [], []>} : vector<8x256xbf16>, vector<256x256xbf16>, vector<8x256xf32> -> vector<8x256xf32>
    %c0_9 = arith.constant 0 : index
    %c0_10 = arith.constant 0 : index
    %12 = vector.load %arg5[%c0_9, %c0_10] : memref<1x256xf32, #tpu.memory_space<vmem>>, vector<1x256xf32>
    %13 = vector.broadcast %12 : vector<1x256xf32> to vector<8x256xf32>
    %14 = arith.addf %11, %13 : vector<8x256xf32>
    %cst_11 = arith.constant 0.000000e+00 : f32
    %15 = vector.broadcast %cst_11 : f32 to vector<8x256xf32>
    %16 = arith.maximumf %14, %15 : vector<8x256xf32>
    %17 = arith.truncf %16 : vector<8x256xf32> to vector<8x256xbf16>
    %c0_12 = arith.constant 0 : index
    %c0_13 = arith.constant 0 : index
    %18 = vector.load %arg6[%c0_12, %c0_13] : memref<256x128xbf16, #tpu.memory_space<vmem>>, vector<256x128xbf16>
    %cst_14 = arith.constant dense<0.000000e+00> : vector<8x128xf32>
    %19 = tpu.matmul %17, %18, %cst_14 {dimension_numbers = #tpu.dot_dimension_numbers<[1], [0], [0], [1], [0, 0, 1, 1], [], []>} : vector<8x256xbf16>, vector<256x128xbf16>, vector<8x128xf32> -> vector<8x128xf32>
    %c0_15 = arith.constant 0 : index
    %c0_16 = arith.constant 0 : index
    %20 = vector.load %arg7[%c0_15, %c0_16] : memref<1x128xf32, #tpu.memory_space<vmem>>, vector<1x128xf32>
    %21 = vector.broadcast %20 : vector<1x128xf32> to vector<8x128xf32>
    %22 = arith.addf %19, %21 : vector<8x128xf32>
    %23 = math.tanh %22 : vector<8x128xf32>
    %cst_17 = arith.constant 1.000000e+00 : f32
    %24 = vector.broadcast %cst_17 : f32 to vector<8x128xf32>
    %25 = arith.mulf %24, %23 : vector<8x128xf32>
    %c0_18 = arith.constant 0 : index
    %c0_19 = arith.constant 0 : index
    %26 = vector.load %arg8[%c0_18, %c0_19] : memref<8x128xf32, #tpu.memory_space<vmem>>, vector<8x128xf32>
    tpu.vector_store %arg8[%c0_18, %c0_19], %25 {strides = array<i32>} : memref<8x128xf32, #tpu.memory_space<vmem>>, vector<8x128xf32>,
    return
  }
  func.func @transform_0(%arg0: i32) -> (i32, i32) {
    %c0_i32 = arith.constant 0 : i32
    %c0_i32_0 = arith.constant 0 : i32
    return %arg0, %c0_i32 : i32, i32
  }
  func.func @transform_1(%arg0: i32) -> (i32, i32) {
    %c0_i32 = arith.constant 0 : i32
    %c0_i32_0 = arith.constant 0 : i32
    %c0_i32_1 = arith.constant 0 : i32
    return %c0_i32, %c0_i32_0 : i32, i32
  }
  func.func @transform_2(%arg0: i32) -> (i32, i32) {
    %c0_i32 = arith.constant 0 : i32
    %c0_i32_0 = arith.constant 0 : i32
    %c0_i32_1 = arith.constant 0 : i32
    return %c0_i32, %c0_i32_0 : i32, i32
  }
  func.func @transform_3(%arg0: i32) -> (i32, i32) {
    %c0_i32 = arith.constant 0 : i32
    %c0_i32_0 = arith.constant 0 : i32
    %c0_i32_1 = arith.constant 0 : i32
    return %c0_i32, %c0_i32_0 : i32, i32
  }
  func.func @transform_4(%arg0: i32) -> (i32, i32) {
    %c0_i32 = arith.constant 0 : i32
    %c0_i32_0 = arith.constant 0 : i32
    %c0_i32_1 = arith.constant 0 : i32
    return %c0_i32, %c0_i32_0 : i32, i32
  }
  func.func @transform_5(%arg0: i32) -> (i32, i32) {
    %c0_i32 = arith.constant 0 : i32
    %c0_i32_0 = arith.constant 0 : i32
    %c0_i32_1 = arith.constant 0 : i32
    return %c0_i32, %c0_i32_0 : i32, i32
  }
  func.func @transform_6(%arg0: i32) -> (i32, i32) {
    %c0_i32 = arith.constant 0 : i32
    %c0_i32_0 = arith.constant 0 : i32
    %c0_i32_1 = arith.constant 0 : i32
    return %c0_i32, %c0_i32_0 : i32, i32
  }
  func.func @transform_7(%arg0: i32) -> (i32, i32) {
    %c0_i32 = arith.constant 0 : i32
    %c0_i32_0 = arith.constant 0 : i32
    return %arg0, %c0_i32 : i32, i32
  }
}

</mosaic_0001>

<bundles_post_ra>
// kernel: tpu_custom_call.1
= control target key start
LH: loop header
LB: loop body
LE: loop exit
PB: predicated region body
PF: predicated region fallthrough
CT: control target
= control target key end

     0   :  { %12 = vsyncpa [#allocation3], 0  ;;  %s988_s0 = inlined_call_operand.hbm [shape: f32[8,8], index: 0, kind: input, shape index: {}]   ;;  %s989_s1 = inlined_call_operand.hbm [shape: bf16[8,256], index: 1, kind: input, shape index: {}]   ;;  %s990_s2 = inlined_call_operand.vmem [shape: f32[1,256], index: 2, kind: input, shape index: {}]   ;;  %s991_s3 = inlined_call_operand.hbm [shape: bf16[256,256], index: 3, kind: input, shape index: {}]   ;;  %s992_s4 = inlined_call_operand.vmem [shape: f32[1,256], index: 4, kind: input, shape index: {}]   ;;  %s993_s5 = inlined_call_operand.hbm [shape: bf16[256,128], index: 5, kind: input, shape index: {}]   ;;  %s994_s6 = inlined_call_operand.vmem [shape: f32[1,128], index: 6, kind: input, shape index: {}]   ;;  %s995_s7 = inlined_call_operand.hbm [shape: f32[8,128], index: 7, kind: output, shape index: {}]  }
   0x1   :  { %13 = vsyncpa [#allocation6], 0 }
   0x2   :  { %14 = vsyncpa [#allocation9], 0 }
   0x3   :  { %15 = vsyncpa [#allocation4], 0  ;;  %s869_s24 = smov [#allocation5]   ;;  %s870_s26 = smov [#allocation2]  }
   0x4   :  { %s32_s25 = sshll.u32 %s869_s24, 4  ;;  %s22_s27 = sshll.u32 %s870_s26, 4  ;;  %s33_s25 = int_to_ptr.vmem [resolvable:$true] %s32_s25  ;;  %s23_s27 = int_to_ptr.vmem [resolvable:$true] %s22_s27 }
   0x5   :  { %s751_s30 = scalar_lea.hbm %s989_s1, 128 }
   0x6   :  { %p752_p0 = scmp.ne.s32.totalorder %s989_s1, %s751_s30  ;;  %p755_p1 = scmp.lt.u32.totalorder %s751_s30, %s989_s1 }
   0x8   :  { %p757_p2 = pnand %p755_p1, %p752_p0 }
   0xa   :  { %760 = shalt.err (!%p757_p2)
}
   0xb   :  { %s761_s12 = scalar_lea.vmem %s33_s25, 128  ;;  %p766_p4 = scmp.lt.s32.totalorder %s33_s25, %s33_s25 }
   0xc   :  { %p762_p3 = scmp.ne.s32.totalorder %s33_s25, %s761_s12  ;;  %p767_p5 = scmp.lt.s32.totalorder %s761_s12, %s761_s12 }
   0xe   :  { %p768_p6 = por %p767_p5, %p766_p4 }
  0x10   :  { %p769_p7 = pnand %p768_p6, %p762_p3 }
  0x12   :  { %772 = shalt.err (!%p769_p7)
}
  0x13   :  { %35 = dma.hbm_to_vmem [thread:$0]  %s989_s1, 128, %s33_s25, [#allocation6]  }
  0x14   :  { %s773_s17 = scalar_lea.hbm %s988_s0, 128 }
  0x15   :  { %p774_p8 = scmp.ne.s32.totalorder %s988_s0, %s773_s17  ;;  %p777_p9 = scmp.lt.u32.totalorder %s773_s17, %s988_s0 }
  0x17   :  { %p779_p10 = pnand %p777_p9, %p774_p8 }
  0x19   :  { %782 = shalt.err (!%p779_p10)
}
  0x1a   :  { %s783_s22 = scalar_lea.vmem %s23_s27, 128  ;;  %p788_p12 = scmp.lt.s32.totalorder %s23_s27, %s23_s27 }
  0x1b   :  { %p784_p11 = scmp.ne.s32.totalorder %s23_s27, %s783_s22  ;;  %p789_p13 = scmp.lt.s32.totalorder %s783_s22, %s783_s22 }
  0x1d   :  { %p790_p0 = por %p789_p13, %p788_p12 }
  0x1f   :  { %p791_p1 = pnand %p790_p0, %p784_p11 }
  0x21   :  { %794 = shalt.err (!%p791_p1)
}
  0x22   :  { %25 = dma.hbm_to_vmem [thread:$0]  %s988_s0, 128, %s23_s27, [#allocation3]  }
  0x23   :  { %s871_s24 = smov [#allocation7]   ;;  %s795_s29 = scalar_lea.hbm %s991_s3, 4096 }
  0x24   :  { %s43_s25 = sshll.u32 %s871_s24, 4  ;;  %p796_p2 = scmp.ne.s32.totalorder %s991_s3, %s795_s29  ;;  %s44_s25 = int_to_ptr.vmem [resolvable:$true] %s43_s25 }
  0x25   :  { %p799_p3 = scmp.lt.u32.totalorder %s795_s29, %s991_s3 }
  0x27   :  { %p801_p4 = pnand %p799_p3, %p796_p2 }
  0x29   :  { %804 = shalt.err (!%p801_p4)
}
  0x2a   :  { %s805_s11 = scalar_lea.vmem %s44_s25, 4096  ;;  %p810_p6 = scmp.lt.s32.totalorder %s44_s25, %s44_s25 }
  0x2b   :  { %p806_p5 = scmp.ne.s32.totalorder %s44_s25, %s805_s11  ;;  %p811_p7 = scmp.lt.s32.totalorder %s805_s11, %s805_s11 }
  0x2d   :  { %p812_p8 = por %p811_p7, %p810_p6 }
  0x2f   :  { %p813_p9 = pnand %p812_p8, %p806_p5 }
  0x31   :  { %816 = shalt.err (!%p813_p9)
}
  0x32   :  { %s872_s0 = smov 128   ;;  %s873_s27 = smov 8  }
  0x33   :  { %49 = dma.hbm_to_vmem [thread:$0]  %s991_s3, 4096, %s44_s25, [#allocation6], %s872_s0, %s872_s0, %s873_s27  }
  0x34   :  { %s874_s14 = smov [#allocation8]   ;;  %s817_s18 = scalar_lea.hbm %s993_s5, 2048 }
  0x35   :  { %s57_s15 = sshll.u32 %s874_s14, 4  ;;  %p818_p10 = scmp.ne.s32.totalorder %s993_s5, %s817_s18  ;;  %s58_s15 = int_to_ptr.vmem [resolvable:$true] %s57_s15 }
  0x36   :  { %p821_p11 = scmp.lt.u32.totalorder %s817_s18, %s993_s5 }
  0x38   :  { %p823_p12 = pnand %p821_p11, %p818_p10 }
  0x3a   :  { %826 = shalt.err (!%p823_p12)
}
  0x3b   :  { %s827_s1 = scalar_lea.vmem %s58_s15, 2048  ;;  %p832_p0 = scmp.lt.s32.totalorder %s58_s15, %s58_s15 }
  0x3c   :  { %p828_p13 = scmp.ne.s32.totalorder %s58_s15, %s827_s1  ;;  %p833_p1 = scmp.lt.s32.totalorder %s827_s1, %s827_s1 }
  0x3e   :  { %p834_p2 = por %p833_p1, %p832_p0 }
  0x40   :  { %p835_p3 = pnand %p834_p2, %p828_p13 }
  0x42   :  { %838 = shalt.err (!%p835_p3)
}
  0x43   :  { %s875_s3 = smov 64   ;;  %s876_s23 = smov 4  }
  0x44   :  { %63 = dma.hbm_to_vmem [thread:$0]  %s993_s5, 2048, %s58_s15, [#allocation9], %s875_s3, %s875_s3, %s876_s23  }
  0x45   :  { %861 = dma.done.wait [#allocation3], 128  }
  0x46   :  { %862 = vsyncadd [#allocation3], 4294967168 }
  0x47   :  { %863 = dma.done.wait [#allocation6], 4224  }
  0x48   :  { %864 = vsyncadd [#allocation6], 4294963072 }
  0x49   :  { %865 = dma.done.wait [#allocation9], 2048  }
  0x4a   :  { %866 = vsyncadd [#allocation9], 4294965248  ;;  %v877_v0 = vmov 0   ;;  %v81_v1 = vld [vmem:[#allocation5] sm:$0xff]  ;;  %vm103_vm0 = vcmask 1043456   ;;  %v79_v2 = vld [vmem:[#allocation2] sm:$0xff]  ;;  %v84_v51 = vlaneseq }
  0x4b   :  { %142 = vmatprep.mubr.bf16.mxu0 %v877_v0  ;;  %v599_v3 = vcombine.high %v81_v1, %v81_v1  ;;  %v598_v4 = vcombine.low %v81_v1, %v81_v1  ;;  %v685_v5 = vld [vmem:[#allocation7 + $0x4] ss:$8 sps:$4 sm:$0xff]   ;;  %v687_v6 = vld [vmem:[#allocation7] ss:$8 sps:$4 sm:$0xff]   ;;  %v688_v7 = vld [vmem:[#allocation7 + $0x14] ss:$8 sps:$4 sm:$0xff]   ;;  %v80_v9 = vpack.c.bf16 %v79_v2, %v79_v2 }
  0x4c   :  { %359 = vmatprep.subr.bf16.mxu1 %v685_v5  ;;  %vm99_vm1 = vcmask 64512   ;;  %v690_v10 = vld [vmem:[#allocation7 + $0x10] ss:$8 sps:$4 sm:$0xff]   ;;  %v691_v11 = vld [vmem:[#allocation7 + $0x24] ss:$8 sps:$4 sm:$0xff]   ;;  %v85_v52 = vshrl.u32 %v84_v51, 7 }
  0x4d   :  { %600 = vmatprep.subr.msk.bf16.mxu0 %vm103_vm0, %v599_v3  ;;  %v105_v8 = vsel %vm103_vm0, %v598_v4, 0  ;;  %360 = vmatpush1.bf16.msra.mxu1 %v687_v6  ;;  %v693_v12 = vld [vmem:[#allocation7 + $0x20] ss:$8 sps:$4 sm:$0xff]   ;;  %v694_v13 = vld [vmem:[#allocation7 + $0x34] ss:$8 sps:$4 sm:$0xff]  }
  0x4e   :  { %111 = vmatpush1.bf16.msra.mxu0 %v105_v8  ;;  %361 = vmatprep.subr.bf16.mxu1 %v688_v7  ;;  %v696_v14 = vld [vmem:[#allocation7 + $0x30] ss:$8 sps:$4 sm:$0xff]   ;;  %v697_v15 = vld [vmem:[#allocation7 + $0x44] ss:$8 sps:$4 sm:$0xff]   ;;  %v699_v16 = vld [vmem:[#allocation7 + $0x40] ss:$8 sps:$4 sm:$0xff]  }
  0x4f   :  { %v700_v17 = vld [vmem:[#allocation7 + $0x54] ss:$8 sps:$4 sm:$0xff]   ;;  %v702_v18 = vld [vmem:[#allocation7 + $0x50] ss:$8 sps:$4 sm:$0xff]   ;;  %v703_v19 = vld [vmem:[#allocation7 + $0x64] ss:$8 sps:$4 sm:$0xff]  }
  0x50   :  { %v705_v20 = vld [vmem:[#allocation7 + $0x60] ss:$8 sps:$4 sm:$0xff]   ;;  %v706_v21 = vld [vmem:[#allocation7 + $0x74] ss:$8 sps:$4 sm:$0xff]   ;;  %v708_v22 = vld [vmem:[#allocation7 + $0x70] ss:$8 sps:$4 sm:$0xff]  }
  0x51   :  { %601 = vmatmul.mubr.msk.bf16.vlgmr.msra.gmra.mrb[0].mxu0 %vm99_vm1, %v80_v9  ;;  %362 = vmatpush1.bf16.msra.mxu1 %v690_v10  ;;  %v709_v23 = vld [vmem:[#allocation7 + $0x84] ss:$8 sps:$4 sm:$0xff]   ;;  %v711_v24 = vld [vmem:[#allocation7 + $0x80] ss:$8 sps:$4 sm:$0xff]   ;;  %v712_v25 = vld [vmem:[#allocation7 + $0x94] ss:$8 sps:$4 sm:$0xff]  }
  0x52   :  { %363 = vmatprep.subr.bf16.mxu1 %v691_v11  ;;  %v714_v26 = vld [vmem:[#allocation7 + $0x90] ss:$8 sps:$4 sm:$0xff]   ;;  %v715_v27 = vld [vmem:[#allocation7 + $0xa4] ss:$8 sps:$4 sm:$0xff]   ;;  %v717_v28 = vld [vmem:[#allocation7 + $0xa0] ss:$8 sps:$4 sm:$0xff]  }
  0x53   :  { %v718_v29 = vld [vmem:[#allocation7 + $0xb4] ss:$8 sps:$4 sm:$0xff]   ;;  %v720_v30 = vld [vmem:[#allocation7 + $0xb0] ss:$8 sps:$4 sm:$0xff]   ;;  %v721_v31 = vld [vmem:[#allocation7 + $0xc4] ss:$8 sps:$4 sm:$0xff]  }
  0x54   :  { %v723_v32 = vld [vmem:[#allocation7 + $0xc0] ss:$8 sps:$4 sm:$0xff]   ;;  %v724_v33 = vld [vmem:[#allocation7 + $0xd4] ss:$8 sps:$4 sm:$0xff]   ;;  %v726_v34 = vld [vmem:[#allocation7 + $0xd0] ss:$8 sps:$4 sm:$0xff]  }
  0x55   :  { %364 = vmatpush1.bf16.msra.mxu1 %v693_v12  ;;  %v727_v35 = vld [vmem:[#allocation7 + $0xe4] ss:$8 sps:$4 sm:$0xff]   ;;  %v729_v36 = vld [vmem:[#allocation7 + $0xe0] ss:$8 sps:$4 sm:$0xff]   ;;  %v730_v37 = vld [vmem:[#allocation7 + $0xf4] ss:$8 sps:$4 sm:$0xff]  }
  0x56   :  { %365 = vmatprep.subr.bf16.mxu1 %v694_v13  ;;  %v732_v38 = vld [vmem:[#allocation7 + $0xf0] ss:$8 sps:$4 sm:$0xff]   ;;  %v733_v39 = vld [vmem:[#allocation8 + $0x40] sm:$0xff]   ;;  %v735_v41 = vld [vmem:[#allocation8 + $0x48] sm:$0xff]   ;;  %v86_v53 = vsub.s32 0, %v85_v52  ;;  %v90_v55 = vsub.s32 1, %v85_v52 }
  0x57   :  { %v734_v40 = vld [vmem:[#allocation8] sm:$0xff]   ;;  %651 = vmatprep.subr.bf16.mxu0 %v733_v39  ;;  %v736_v42 = vld [vmem:[#allocation8 + $0x8] sm:$0xff]   ;;  %v737_v43 = vld [vmem:[#allocation8 + $0x50] sm:$0xff]  }
  0x58   :  { %652 = vmatpush3.bf16.msra.mxu0 %v734_v40  ;;  %v738_v44 = vld [vmem:[#allocation8 + $0x10] sm:$0xff]   ;;  %v739_v45 = vld [vmem:[#allocation8 + $0x58] sm:$0xff]   ;;  %v741_v47 = vld [vmem:[#allocation8 + $0x60] sm:$0xff]  }
  0x59   :  { %366 = vmatpush1.bf16.msra.mxu1 %v696_v14  ;;  %653 = vmatprep.subr.bf16.mxu0 %v735_v41  ;;  %v740_v46 = vld [vmem:[#allocation8 + $0x18] sm:$0xff]   ;;  %v742_v48 = vld [vmem:[#allocation8 + $0x20] sm:$0xff]   ;;  %v743_v49 = vld [vmem:[#allocation8 + $0x68] sm:$0xff]  }
  0x5a   :  { %367 = vmatprep.subr.bf16.mxu1 %v697_v15  ;;  %v744_v50 = vld [vmem:[#allocation8 + $0x28] sm:$0xff]   ;;  %v82_v54 = vld [vmem:[%s990_s2] sm:$0x3]  ;;  %v747_v6 = vld [vmem:[#allocation8 + $0x78] sm:$0xff]  }
  0x5b   :  { %v87_v56 = vrot.slane %v82_v54, %v86_v53  ;;  %v91_v57 = vrot.slane %v82_v54, %v90_v55  ;;  %v745_v4 = vld [vmem:[#allocation8 + $0x70] sm:$0xff]   ;;  %v748_v7 = vld [vmem:[#allocation8 + $0x38] sm:$0xff]  }
  0x5c   :  { %654 = vmatpush3.bf16.msra.mxu0 %v736_v42  ;;  %v746_v5 = vld [vmem:[#allocation8 + $0x30] sm:$0xff]  }
  0x5d   :  { %368 = vmatpush1.bf16.msra.mxu1 %v699_v16  ;;  %655 = vmatprep.subr.bf16.mxu0 %v737_v43  ;;  %v187_v8 = vld [vmem:[%s992_s4] sm:$0x3]  ;;  %s878_s4 = smov [#allocation10]  }
  0x5e   :  { %369 = vmatprep.subr.bf16.mxu1 %v700_v17  ;;  %v192_v9 = vrot.slane %v187_v8, %v86_v53  ;;  %v196_v10 = vrot.slane %v187_v8, %v90_v55  ;;  %s587_s8 = sshll.u32 %s878_s4, 4  ;;  %s588_s8 = int_to_ptr.vmem [resolvable:$true] %s587_s8 }
  0x5f   :  { %s839_s9 = scalar_lea.vmem %s588_s8, 128  ;;  %p844_p5 = scmp.lt.s32.totalorder %s588_s8, %s588_s8 }
  0x60   :  { %656 = vmatpush3.bf16.msra.mxu0 %v738_v44  ;;  %p840_p4 = scmp.ne.s32.totalorder %s588_s8, %s839_s9  ;;  %p845_p6 = scmp.lt.s32.totalorder %s839_s9, %s839_s9 }
  0x61   :  { %370 = vmatpush1.bf16.msra.mxu1 %v702_v18  ;;  %657 = vmatprep.subr.bf16.mxu0 %v739_v45 }
  0x62   :  { %371 = vmatprep.subr.bf16.mxu1 %v703_v19  ;;  %p846_p7 = por %p845_p6, %p844_p5 }
  0x64   :  { %658 = vmatpush3.bf16.msra.mxu0 %v740_v46  ;;  %p847_p8 = pnand %p846_p7, %p840_p4 }
  0x65   :  { %372 = vmatpush1.bf16.msra.mxu1 %v705_v20  ;;  %659 = vmatprep.subr.bf16.mxu0 %v741_v47 }
  0x66   :  { %373 = vmatprep.subr.bf16.mxu1 %v706_v21 }
  0x68   :  { %660 = vmatpush3.bf16.msra.mxu0 %v742_v48 }
  0x69   :  { %374 = vmatpush1.bf16.msra.mxu1 %v708_v22  ;;  %661 = vmatprep.subr.bf16.mxu0 %v743_v49  ;;  %v634_v22 = vld [vmem:[%s994_s6] ss:$0 sm:$0xff] }
  0x6a   :  { %375 = vmatprep.subr.bf16.mxu1 %v709_v23 }
  0x6c   :  { %662 = vmatpush3.bf16.msra.mxu0 %v744_v50 }
  0x6d   :  { %376 = vmatpush1.bf16.msra.mxu1 %v711_v24  ;;  %663 = vmatprep.subr.bf16.mxu0 %v745_v4 }
  0x6e   :  { %377 = vmatprep.subr.bf16.mxu1 %v712_v25 }
  0x70   :  { %664 = vmatpush3.bf16.msra.mxu0 %v746_v5 }
  0x71   :  { %378 = vmatpush1.bf16.msra.mxu1 %v714_v26  ;;  %665 = vmatprep.subr.bf16.mxu0 %v747_v6 }
  0x72   :  { %379 = vmatprep.subr.bf16.mxu1 %v715_v27 }
  0x74   :  { %666 = vmatpush3.bf16.msra.mxu0 %v748_v7 }
  0x75   :  { %380 = vmatpush1.bf16.msra.mxu1 %v717_v28 }
  0x76   :  { %381 = vmatprep.subr.bf16.mxu1 %v718_v29 }
  0x79   :  { %382 = vmatpush1.bf16.msra.mxu1 %v720_v30 }
  0x7a   :  { %383 = vmatprep.subr.bf16.mxu1 %v721_v31 }
  0x7d   :  { %384 = vmatpush1.bf16.msra.mxu1 %v723_v32 }
  0x7e   :  { %385 = vmatprep.subr.bf16.mxu1 %v724_v33 }
  0x81   :  { %386 = vmatpush1.bf16.msra.mxu1 %v726_v34 }
  0x82   :  { %387 = vmatprep.subr.bf16.mxu1 %v727_v35 }
  0x85   :  { %388 = vmatpush1.bf16.msra.mxu1 %v729_v36 }
  0x86   :  { %389 = vmatprep.subr.bf16.mxu1 %v730_v37 }
  0x89   :  { %390 = vmatpush1.bf16.msra.mxu1 %v732_v38 }
 0x124   :  { %v144_v58 = vpop.f32.mrb[0].mxu0 }
 0x125   :  { %v145_v59 = vadd.f32 %v144_v58, %v87_v56  ;;  %v146_v60 = vpop.f32.mrb[1].mxu0 }
 0x126   :  { %v147_v61 = vadd.f32 %v146_v60, %v91_v57  ;;  %v148_v62 = vpop.f32.mrb[2].mxu0 }
 0x127   :  { %v151_v63 = vmax.f32 %v145_v59, 0.0  ;;  %v149_v0 = vpop.f32.mrb[3].mxu0 }
 0x128   :  { %v152_v1 = vmax.f32 %v147_v61, 0.0 }
 0x129   :  { %v153_v3 = vpack.c.bf16 %v151_v63, %v151_v63 }
 0x12a   :  { %v154_v2 = vpack.c.bf16 %v152_v1, %v152_v1 }
 0x12c   :  { %391 = vmatprep.mubr.bf16.mxu1 %v154_v2 }
 0x12d   :  { %392 = vmatmul.mubr.bf16.vlgmr.msra.gmra.mrb[0].mxu1 %v153_v3 }
 0x200   :  { %v393_v11 = vpop.f32.mrb[0].mxu1 }
 0x201   :  { %v394_v12 = vadd.f32 %v393_v11, %v192_v9  ;;  %v395_v13 = vpop.f32.mrb[1].mxu1 }
 0x202   :  { %v396_v14 = vadd.f32 %v395_v13, %v196_v10  ;;  %v397_v15 = vpop.f32.mrb[2].mxu1 }
 0x203   :  { %v400_v16 = vmax.f32 %v394_v12, 0.0  ;;  %v398_v17 = vpop.f32.mrb[3].mxu1 }
 0x204   :  { %v401_v18 = vmax.f32 %v396_v14, 0.0 }
 0x205   :  { %v402_v20 = vpack.c.bf16 %v400_v16, %v400_v16 }
 0x206   :  { %v403_v19 = vpack.c.bf16 %v401_v18, %v401_v18 }
 0x208   :  { %571 = vmatprep.mubr.bf16.mxu0 %v403_v19 }
 0x209   :  { %572 = vmatmul.mubr.bf16.vlgmr.msra.gmra.mrb[4].mxu0 %v402_v20 }
 0x2dc   :  { %v667_v21 = vpop.f32.mrb[4].mxu0 }
 0x2dd   :  { %v668_v23 = vpop.f32.mrb[5].mxu0 }
 0x2de   :  { %v669_v24 = vadd.f32 %v668_v23, %v667_v21  ;;  %v670_v25 = vpop.f32.mrb[6].mxu0 }
 0x2df   :  { %v671_v26 = vpop.f32.mrb[7].mxu0 }
 0x2e0   :  { %v574_v27 = vadd.f32 %v669_v24, %v634_v22 }
 0x2e2   :  { %749 = vtanh.f32 %v574_v27 }
 0x2ec   :  { %v750_v28 = vpop.eup %749 }
 0x2ed   :  { %580 = vst [vmem:[#allocation10] sm:$0xff] %v750_v28 }
 0x2ee   :  { %850 = shalt.err (!%p847_p8)
}
 0x2ef   :  { %s851_s11 = scalar_lea.hbm %s995_s7, 128 }
 0x2f0   :  { %p852_p9 = scmp.ne.s32.totalorder %s995_s7, %s851_s11  ;;  %p855_p10 = scmp.lt.u32.totalorder %s851_s11, %s995_s7 }
 0x2f2   :  { %p857_p11 = pnand %p855_p10, %p852_p9 }
 0x2f4   :  { %860 = shalt.err (!%p857_p11)
}
 0x2f5   :  { %590 = dma.vmem_to_hbm [thread:$0]  %s588_s8, 128, %s995_s7, [#allocation4]  }
 0x2f6   :  { %867 = dma.done.wait [#allocation4], 128  }
 0x2f7   :  { %868 = vsyncadd [#allocation4], 4294967168 }
 0x2f8   :  { %594 = vsyncpa [#allocation3], 1 }
 0x2f9   :  { %595 = vsyncpa [#allocation6], 1 }
 0x2fa   :  { %596 = vsyncpa [#allocation9], 1 }
 0x2fb   :  { %597 = vsyncpa [#allocation4], 1 }

</bundles_post_ra>
